<compile_context>
chip_gen: v6e
topology: v6e:2x2x1
jax: 0.10.0
libtpu: 0.0.40
codegen_flags: <defaults>
</compile_context>

<pallas_src>
import math

import jax
import jax.numpy as jnp
from jax.experimental import pallas as pl
from jax.experimental.pallas import tpu as pltpu


def _round_up(a, b):
    return ((a + b - 1) // b) * b


_VMEM_LIMIT_BYTES = 40 * 1024 * 1024   # safe on v5e/v6e (128 MiB) and v7x (64 MiB)
_TILE_BUDGET_BYTES = 26 * 1024 * 1024  # all double-buffered tiles must fit here
_MAX_X_TILE_BYTES = 10 * 1024 * 1024   # per-buffer x tile target ceiling


def _select_tiles(N, D, itemsize):
    """Pick (tm, tk): batch rows and reduction columns per grid step."""
    d_lane = _round_up(D, 128)             # lane padding of the x / w tiles in VMEM
    per_set = _TILE_BUDGET_BYTES // 2      # every tile is (at least) double-buffered
    out_row_bytes = 128 * 4                # (tm, 1) f32 block pads lanes to 128
    w_bytes = 8 * d_lane * itemsize        # (1, D) tile pads sublanes to 8

    # Preferred path: full-D reduction per step (tk = D, no K axis).
    tm_budget = (per_set - w_bytes) // (d_lane * itemsize + out_row_bytes)
    if tm_budget >= 8:
        tm = min(tm_budget, _MAX_X_TILE_BYTES // (d_lane * itemsize))
        tm = max(8, (tm // 8) * 8)
        return tm, D

    # Huge D: split the reduction dim over a trailing "arbitrary" K grid axis
    # and accumulate into the resident (tm, 1) output block.
    tm = 8
    tk = (per_set - tm * out_row_bytes) // (2 * 8 * itemsize)  # x rows + padded w rows
    tk = max(128, (tk // 128) * 128)
    return tm, tk


def _make_kernel(D, tk, needs_k_mask):
    def kernel(x_ref, w_ref, b_ref, o_ref):
        # x_ref: (tm, tk) streamed tile, w_ref: (1, tk), b_ref: (1,) SMEM scalar,
        # o_ref: (tm, 1) f32 output block, resident across the K grid axis.
        k = pl.program_id(1)
        x = x_ref[...].astype(jnp.float32)
        w = w_ref[...].astype(jnp.float32)
        prod = x * w                                   # VPU, broadcast w over rows
        if needs_k_mask:
            # Boundary K block: zero out garbage tail columns before reducing.
            lane = jax.lax.broadcasted_iota(jnp.int32, prod.shape, 1)
            prod = jnp.where(lane < (D - k * tk), prod, 0.0)
        partial = jnp.sum(prod, axis=-1, keepdims=True)  # (tm, 1) f32, XLU reduce

        @pl.when(k == 0)
        def _init():
            o_ref[...] = partial + b_ref[0]

        @pl.when(k > 0)
        def _accumulate():
            o_ref[...] = o_ref[...] + partial

    return kernel


def gpu_linear_svm_forward(x, weight, bias, *, tm=None, tk=None, stream_dtype=None):
    """Forward pass of GPULinearSVM: y = x @ weight.T + bias, output shape (N, 1).

    x:      (N, D)
    weight: (1, D)  (PyTorch nn.Linear weight layout)
    bias:   (1,)
    stream_dtype: optionally stream x/w as e.g. jnp.bfloat16 (f32 accumulation).
    """
    N, D = x.shape
    dt = jnp.dtype(jnp.float32 if stream_dtype is None else stream_dtype)
    x = x.astype(dt)
    w = weight.reshape(1, D).astype(dt)
    b = bias.reshape(1).astype(jnp.float32)

    tm_auto, tk_auto = _select_tiles(N, D, dt.itemsize)
    tm = tm_auto if tm is None else int(tm)
    tk = tk_auto if tk is None else int(tk)

    # Sanitize against the (8, 128) layout constraints.
    tk = D if tk >= D else max(128, (tk // 128) * 128)
    tm = min(tm, _round_up(N, 8))
    tm = max(8, (tm // 8) * 8)

    # v7x megacore / pipelining: never collapse a non-trivial batch to one step.
    if N * D * dt.itemsize > 2 * 1024 * 1024 and pl.cdiv(N, tm) == 1:
        tm = max(8, _round_up(pl.cdiv(N, 2), 8))

    grid_m = pl.cdiv(N, tm)
    grid_k = pl.cdiv(D, tk)
    needs_k_mask = (D % tk) != 0

    kernel = _make_kernel(D, tk, needs_k_mask)

    cost = pl.CostEstimate(
        flops=2 * N * D,
        transcendentals=0,
        bytes_accessed=dt.itemsize * (N * D + D) + 4 * (N + 1),
    )

    out = pl.pallas_call(
        kernel,
        out_shape=jax.ShapeDtypeStruct((N, 1), jnp.float32),
        grid_spec=pltpu.PrefetchScalarGridSpec(
            num_scalar_prefetch=0,
            grid=(grid_m, grid_k),
            in_specs=[
                pl.BlockSpec((tm, tk), lambda i, k: (i, k)),          # x: streamed tiles
                pl.BlockSpec((1, tk), lambda i, k: (0, k)),           # weight
                pl.BlockSpec(memory_space=pltpu.MemorySpace.SMEM),    # bias: SMEM scalar
            ],
            out_specs=pl.BlockSpec((tm, 1), lambda i, k: (i, 0)),     # resident accumulator
        ),
        compiler_params=pltpu.CompilerParams(
            dimension_semantics=("parallel", "arbitrary"),
            vmem_limit_bytes=_VMEM_LIMIT_BYTES,
        ),
        cost_estimate=cost,
    )(x, w, b)
    return out


def init_params(key, input_dim):
    """Deterministic init matching the module: xavier_uniform_ weight, zero bias."""
    bound = math.sqrt(6.0 / (input_dim + 1))
    weight = jax.random.uniform(
        key, (1, input_dim), dtype=jnp.float32, minval=-bound, maxval=bound
    )
    bias = jnp.zeros((1,), dtype=jnp.float32)
    return weight, bias


if __name__ == "__main__":
    key = jax.random.PRNGKey(0)
    k_x, k_w, k1, k2, k3 = jax.random.split(key, 5)

    # Case 1: tiny batch, single block.
    N, D = 8, 32
    x = jax.random.normal(k_x, (N, D), dtype=jnp.float32)
    weight, bias = init_params(k_w, D)
    out = jax.block_until_ready(gpu_linear_svm_forward(x, weight, bias))
    ref = x @ weight.T + bias
    assert out.shape == (N, 1)
    assert jnp.allclose(out, ref, atol=1e-4, rtol=1e-4)

    # Case 2: ragged batch, multi-block pipelined path (no padding copy of x;
    # boundary batch block exercised).
    N2, D2 = 300, 64
    x2 = jax.random.normal(k1, (N2, D2), dtype=jnp.float32)
    w2, b2 = init_params(k_w, D2)
    out2 = jax.block_until_ready(gpu_linear_svm_forward(x2, w2, b2, tm=128))
    ref2 = x2 @ w2.T + b2
    assert out2.shape == (N2, 1)
    assert jnp.allclose(out2, ref2, atol=1e-4, rtol=1e-4)

    # Case 3: forced K-split with ragged reduction dim (exercises the lane mask
    # and the resident-output accumulator used for huge input_dim).
    N3, D3 = 64, 300
    x3 = jax.random.normal(k2, (N3, D3), dtype=jnp.float32)
    w3, b3 = init_params(k_w, D3)
    out3 = jax.block_until_ready(gpu_linear_svm_forward(x3, w3, b3, tm=64, tk=128))
    ref3 = x3 @ w3.T + b3
    assert out3.shape == (N3, 1)
    assert jnp.allclose(out3, ref3, atol=1e-4, rtol=1e-4)

    # Case 4: bf16 streaming (halves HBM traffic on the bandwidth-bound GEMV),
    # float32 accumulation; loose tolerance for the bf16 inputs.
    N4, D4 = 256, 128
    x4 = jax.random.normal(k3, (N4, D4), dtype=jnp.float32)
    w4, b4 = init_params(k_w, D4)
    out4 = jax.block_until_ready(
        gpu_linear_svm_forward(x4, w4, b4, stream_dtype=jnp.bfloat16))
    ref4 = x4 @ w4.T + b4
    assert out4.shape == (N4, 1)
    assert jnp.allclose(out4, ref4, atol=5e-2, rtol=5e-2)

    # TODO(synk): hinge_loss / L2 regularization are training-time loss terms,
    # not part of forward(); not implemented as a kernel.
    print("KERNEL_OK")
</pallas_src>

<mosaic_0001>
module attributes {stable_mosaic.version = 11 : i64} {
  func.func @kernel(%arg0: i32, %arg1: i32, %arg2: memref<8x32xf32, #tpu.memory_space<vmem>>, %arg3: memref<1x32xf32, #tpu.memory_space<vmem>>, %arg4: memref<1xf32, #tpu.memory_space<smem>>, %arg5: memref<8x1xf32, #tpu.memory_space<vmem>>) attributes {dimension_semantics = [#tpu.dimension_semantics<parallel>, #tpu.dimension_semantics<arbitrary>], iteration_bounds = array<i64: 1, 1>, scalar_prefetch = 0 : i64, scratch_operands = 0 : i64, tpu.core_type = #tpu.core_type<tc>, window_params = [{transform_indices = @transform_0, window_bounds = array<i64: 8, 32>}, {transform_indices = @transform_1, window_bounds = array<i64: 1, 32>}, {transform_indices = @transform_2, window_bounds = array<i64: 1>}, {transform_indices = @transform_3, window_bounds = array<i64: 8, 1>}]} {
    %c0 = arith.constant 0 : index
    %c0_0 = arith.constant 0 : index
    %0 = vector.load %arg2[%c0, %c0_0] : memref<8x32xf32, #tpu.memory_space<vmem>>, vector<8x32xf32>
    %c0_1 = arith.constant 0 : index
    %c0_2 = arith.constant 0 : index
    %1 = vector.load %arg3[%c0_1, %c0_2] : memref<1x32xf32, #tpu.memory_space<vmem>>, vector<1x32xf32>
    %2 = vector.broadcast %1 : vector<1x32xf32> to vector<8x32xf32>
    %3 = arith.mulf %0, %2 : vector<8x32xf32>
    %cst = arith.constant dense<0.000000e+00> : vector<8xf32>
    %4 = vector.multi_reduction <add>, %3, %cst [1] : vector<8x32xf32> to vector<8xf32>
    %5 = vector.shape_cast %4 : vector<8xf32> to vector<8x1xf32>
    %c0_i32 = arith.constant 0 : i32
    %6 = arith.cmpi eq, %arg1, %c0_i32 : i32
    %7 = arith.extui %6 : i1 to i32
    %c0_i32_3 = arith.constant 0 : i32
    %8 = arith.cmpi ne, %7, %c0_i32_3 : i32
    scf.if %8 {
      %c0_6 = arith.constant 0 : index
      %12 = memref.load %arg4[%c0_6] : memref<1xf32, #tpu.memory_space<smem>>
      %13 = vector.broadcast %12 : f32 to vector<8x1xf32>
      %14 = arith.addf %5, %13 : vector<8x1xf32>
      %c0_7 = arith.constant 0 : index
      %c0_8 = arith.constant 0 : index
      %15 = vector.load %arg5[%c0_7, %c0_8] : memref<8x1xf32, #tpu.memory_space<vmem>>, vector<8x1xf32>
      tpu.vector_store %arg5[%c0_7, %c0_8], %14 {strides = array<i32>} : memref<8x1xf32, #tpu.memory_space<vmem>>, vector<8x1xf32>,
    } else {
    }
    %c0_i32_4 = arith.constant 0 : i32
    %9 = arith.cmpi sgt, %arg1, %c0_i32_4 : i32
    %10 = arith.extui %9 : i1 to i32
    %c0_i32_5 = arith.constant 0 : i32
    %11 = arith.cmpi ne, %10, %c0_i32_5 : i32
    scf.if %11 {
      %c0_6 = arith.constant 0 : index
      %c0_7 = arith.constant 0 : index
      %12 = vector.load %arg5[%c0_6, %c0_7] : memref<8x1xf32, #tpu.memory_space<vmem>>, vector<8x1xf32>
      %13 = arith.addf %12, %5 : vector<8x1xf32>
      %c0_8 = arith.constant 0 : index
      %c0_9 = arith.constant 0 : index
      %14 = vector.load %arg5[%c0_8, %c0_9] : memref<8x1xf32, #tpu.memory_space<vmem>>, vector<8x1xf32>
      tpu.vector_store %arg5[%c0_8, %c0_9], %13 {strides = array<i32>} : memref<8x1xf32, #tpu.memory_space<vmem>>, vector<8x1xf32>,
    } else {
    }
    return
  }
  func.func @transform_0(%arg0: i32, %arg1: i32) -> (i32, i32) {
    %c0_i32 = arith.constant 0 : i32
    return %arg0, %arg1 : i32, i32
  }
  func.func @transform_1(%arg0: i32, %arg1: i32) -> (i32, i32) {
    %c0_i32 = arith.constant 0 : i32
    %c0_i32_0 = arith.constant 0 : i32
    return %c0_i32, %arg1 : i32, i32
  }
  func.func @transform_2(%arg0: i32, %arg1: i32) -> i32 {
    %c0_i32 = arith.constant 0 : i32
    %c0_i32_0 = arith.constant 0 : i32
    return %c0_i32 : i32
  }
  func.func @transform_3(%arg0: i32, %arg1: i32) -> (i32, i32) {
    %c0_i32 = arith.constant 0 : i32
    %c0_i32_0 = arith.constant 0 : i32
    return %arg0, %c0_i32 : i32, i32
  }
}

</mosaic_0001>

<bundles_post_ra>
// kernel: tpu_custom_call.1
= control target key start
LH: loop header
LB: loop body
LE: loop exit
PB: predicated region body
PF: predicated region fallthrough
CT: control target
= control target key end

     0   :  { %9 = vsyncpa [#allocation4], 0  ;;  %s86_s12 = smov [#allocation3]   ;;  %s119_s0 = inlined_call_operand.hbm [shape: f32[8,32], index: 0, kind: input, shape index: {}]   ;;  %s120_s1 = inlined_call_operand.vmem [shape: f32[1,32], index: 1, kind: input, shape index: {}]   ;;  %s121_s2 = inlined_call_operand.<no memory space> [shape: f32[1], index: 2, kind: input, shape index: {}]   ;;  %s122_s3 = inlined_call_operand.vmem [shape: f32[8,1], index: 3, kind: output, shape index: {}]  }
   0x1   :  { %s16_s13 = sshll.u32 %s86_s12, 4  ;;  %s17_s13 = int_to_ptr.vmem [resolvable:$true] %s16_s13 }
   0x2   :  { %s72_s14 = scalar_lea.vmem %s17_s13, 128  ;;  %p77_p1 = scmp.lt.s32.totalorder %s17_s13, %s17_s13 }
   0x3   :  { %p73_p0 = scmp.ne.s32.totalorder %s17_s13, %s72_s14  ;;  %p78_p2 = scmp.lt.s32.totalorder %s72_s14, %s72_s14 }
   0x5   :  { %p79_p3 = por %p78_p2, %p77_p1 }
   0x7   :  { %p80_p4 = pnand %p79_p3, %p73_p0 }
   0x9   :  { %83 = shalt.err (!%p80_p4)
}
   0xa   :  { %19 = dma.hbm_to_vmem [thread:$0]  %s119_s0, 128, %s17_s13, [#allocation4]  }
   0xb   :  { %84 = dma.done.wait [#allocation4], 128  }
   0xc   :  { %85 = vsyncadd [#allocation4], 4294967168  ;;  %v27_v0 = vld [vmem:[#allocation3] sm:$0xff]  ;;  %vm36_vm0 = vcmask 261120   ;;  %v45_v4 = vstv %s121_s2  ;;  %vm47_vm1 = vcmask 7168  }
   0xd   :  { %v62_v1 = vld [vmem:[%s120_s1] ss:$0 sm:$0xff] }
   0xe   :  { %v35_v2 = vmul.f32 %v62_v1, %v27_v0 }
  0x10   :  { %v37_v3 = vsel %vm36_vm0, %v35_v2, 0.0 }
  0x11   :  { %38 = vadd.xlane.f32.xlu0 %v37_v3 }
  0x9a   :  { %v39_v5 = vpop.xlane.xlu0 %38 }
  0x9b   :  { %v46_v6 = vadd.f32 %v45_v4, %v39_v5 }
  0x9d   :  { %48 = vst.msk [vmem:[%s122_s3] sm:$0xff] %vm47_vm1, %v46_v6 }
  0x9e   :  { %61 = vsyncpa [#allocation4], 1 }

</bundles_post_ra>
